<compile_context>
chip_gen: v6e
topology: v6e:2x2x1
jax: 0.10.0
libtpu: 0.0.40
codegen_flags: <defaults>
</compile_context>

<pallas_src>
import math

import jax
import jax.numpy as jnp
from jax.experimental import pallas as pl
from jax.experimental.pallas import tpu as pltpu

LATENT_DIM = 32
HIDDEN1 = 64
HIDDEN2 = 32
NUM_CLASSES = 8
BATCH = 8

LANE = 128      # TPU vreg lane width
SUBLANE = 8
TB_CAP = 2048   # batch-tile cap (review: sweep 2048-4096)


def _round_up(x, m):
    return (x + m - 1) // m * m


def mlp_kernel(z_ref, w_ref, b_ref, out_ref):
    """z_ref: (tb, D) f32; w_ref: (r1 + 256, 128) bf16; b_ref: (8, 128) f32."""
    d = z_ref.shape[1]
    r1 = w_ref.shape[0] - 2 * LANE            # rows reserved for W1 (>= d)

    z = z_ref[...].astype(jnp.bfloat16)       # cast in VMEM, no wrapper HBM round trip
    w1 = w_ref[0:d, :]                        # (d, 128)  bf16
    w2 = w_ref[r1:r1 + LANE, :]               # (128,128) bf16  (row HIDDEN1 = b2 | pilot)
    w3 = w_ref[r1 + LANE:r1 + 2 * LANE, :]    # (128,128) bf16  (row HIDDEN2 = b3)
    b1 = b_ref[0:1, :]                        # (1, 128)  f32   (lane HIDDEN1 = 1.0 pilot)

    # Layer 1: Linear(latent, 64) + ReLU.  b1's lane HIDDEN1 is 1.0, so lane 64 of h1
    # becomes a constant-one pilot that carries b2/b3 through the next two matmuls.
    h1 = jnp.dot(z, w1, preferred_element_type=jnp.float32) + b1
    h1 = jnp.maximum(h1.astype(jnp.bfloat16), 0)          # bf16 ReLU (pilot lane stays 1)
    # Layer 2: Linear(64, 32) + ReLU; b2 added by the MXU via the pilot lane.
    h2 = jnp.dot(h1, w2, preferred_element_type=jnp.float32)
    h2 = jnp.maximum(h2.astype(jnp.bfloat16), 0)          # pilot now at lane HIDDEN2
    # Layer 3: Linear(32, num_classes); b3 added by the MXU via the pilot lane.
    logits = jnp.dot(h2, w3, preferred_element_type=jnp.float32)
    out_ref[...] = logits[:, :out_ref.shape[1]].astype(out_ref.dtype)


def mlp_classifier(z, weight_slab, bias_slab, num_classes, *, tb=None):
    """Forward pass. z: (B, latent_dim) f32. Returns (B, num_classes) f32 logits."""
    B, D = z.shape
    if tb is None:
        # Large tile amortizes the ~0.35 us per-grid-step overhead; small batches
        # collapse to a single exact-fit block.
        tb = min(TB_CAP, _round_up(B, SUBLANE))
    assert tb % SUBLANE == 0, "batch tile must be a multiple of 8"

    grid = (pl.cdiv(B, tb),)   # ragged last block: OOB reads masked, OOB writes dropped
    flops = 2 * B * (D * HIDDEN1 + HIDDEN1 * HIDDEN2 + HIDDEN2 * num_classes)
    bytes_accessed = (z.size * z.dtype.itemsize
                      + B * num_classes * 4
                      + weight_slab.size * weight_slab.dtype.itemsize
                      + bias_slab.size * bias_slab.dtype.itemsize)

    return pl.pallas_call(
        mlp_kernel,
        out_shape=jax.ShapeDtypeStruct((B, num_classes), jnp.float32),
        grid_spec=pl.GridSpec(
            grid=grid,
            in_specs=[
                pl.BlockSpec((tb, D), lambda i: (i, 0)),             # z tile (f32)
                pl.BlockSpec(weight_slab.shape, lambda i: (0, 0)),   # packed weights
                pl.BlockSpec(bias_slab.shape, lambda i: (0, 0)),     # packed b1 + pilot
            ],
            out_specs=pl.BlockSpec((tb, num_classes), lambda i: (i, 0)),
        ),
        compiler_params=pltpu.CompilerParams(
            dimension_semantics=("parallel",)),
        cost_estimate=pl.CostEstimate(flops=flops, transcendentals=0,
                                      bytes_accessed=bytes_accessed),
    )(z, weight_slab, bias_slab)


def init_params(key, latent_dim, num_classes):
    """torch.nn.Linear-style init (U[-1/sqrt(fan_in), 1/sqrt(fan_in)]), weights (in, out)."""
    dims = [(latent_dim, HIDDEN1), (HIDDEN1, HIDDEN2), (HIDDEN2, num_classes)]
    params = []
    for fan_in, fan_out in dims:
        key, kw, kb = jax.random.split(key, 3)
        bound = 1.0 / math.sqrt(fan_in)
        w = jax.random.uniform(kw, (fan_in, fan_out), jnp.float32, -bound, bound)
        b = jax.random.uniform(kb, (fan_out,), jnp.float32, -bound, bound)
        params += [w, b]
    return tuple(params)


def pack_params(params, latent_dim, num_classes):
    """Pack (w1,b1,w2,b2,w3,b3) into one bf16 weight slab + one f32 bias slab.

    b2 / b3 are folded into W2 / W3 as an extra row addressed by the constant-one
    pilot lane; b1 (row 0 of the bias slab) carries the pilot 1.0 at lane HIDDEN1.
    """
    w1, b1, w2, b2, w3, b3 = params
    h1, h2 = w1.shape[1], w2.shape[1]
    assert h1 < LANE and h2 < LANE
    r1 = _round_up(latent_dim, 16)     # bf16 sublane-tile aligned row offset

    w1_pad = jnp.zeros((r1, LANE), jnp.float32).at[:latent_dim, :h1].set(w1)
    w2_pad = (jnp.zeros((LANE, LANE), jnp.float32)
              .at[:h1, :h2].set(w2)
              .at[h1, :h2].set(b2)       # bias row, selected by pilot lane of h1
              .at[h1, h2].set(1.0))      # propagates the pilot to lane h2 of h2
    w3_pad = (jnp.zeros((LANE, LANE), jnp.float32)
              .at[:h2, :num_classes].set(w3)
              .at[h2, :num_classes].set(b3))
    weight_slab = jnp.concatenate([w1_pad, w2_pad, w3_pad], axis=0).astype(jnp.bfloat16)

    bias_slab = (jnp.zeros((SUBLANE, LANE), jnp.float32)
                 .at[0, :h1].set(b1)
                 .at[0, h1].set(1.0))    # pilot lane
    return weight_slab, bias_slab


def mlp_reference(z, params):
    """Pure-JAX reference matching the kernel's operand precision
    (bf16 weights/activations, f32 b1 add, bf16 b2/b3)."""
    w1, b1, w2, b2, w3, b3 = params

    def q(x):  # bf16 round-trip
        return x.astype(jnp.bfloat16).astype(jnp.float32)

    h1 = jnp.maximum(q(z) @ q(w1) + b1, 0.0)
    h2 = jnp.maximum(q(h1) @ q(w2) + q(b2), 0.0)
    return q(h2) @ q(w3) + q(b3)


if __name__ == "__main__":
    key = jax.random.PRNGKey(0)
    kz, kp = jax.random.split(key)
    z = jax.random.normal(kz, (BATCH, LATENT_DIM), jnp.float32)
    params = init_params(kp, LATENT_DIM, NUM_CLASSES)
    weight_slab, bias_slab = pack_params(params, LATENT_DIM, NUM_CLASSES)

    # Small-batch run (single exact-fit grid step).
    out = jax.block_until_ready(
        mlp_classifier(z, weight_slab, bias_slab, NUM_CLASSES))
    ref = mlp_reference(z, params)
    assert out.shape == (BATCH, NUM_CLASSES)
    assert jnp.allclose(out, ref, atol=1e-2, rtol=1e-2), \
        float(jnp.max(jnp.abs(out - ref)))

    # Ragged batch + multi-step "parallel" grid (exercises cdiv edge-block masking).
    z2 = jax.random.normal(jax.random.PRNGKey(1), (300, LATENT_DIM), jnp.float32)
    out2 = jax.block_until_ready(
        mlp_classifier(z2, weight_slab, bias_slab, NUM_CLASSES, tb=128))
    ref2 = mlp_reference(z2, params)
    assert out2.shape == (300, NUM_CLASSES)
    assert jnp.allclose(out2, ref2, atol=1e-2, rtol=1e-2), \
        float(jnp.max(jnp.abs(out2 - ref2)))

    print("KERNEL_OK")
</pallas_src>

<mosaic_0001>
module attributes {stable_mosaic.version = 11 : i64} {
  func.func @mlp_kernel(%arg0: i32, %arg1: memref<8x32xf32, #tpu.memory_space<vmem>>, %arg2: memref<288x128xbf16, #tpu.memory_space<vmem>>, %arg3: memref<8x128xf32, #tpu.memory_space<vmem>>, %arg4: memref<8x8xf32, #tpu.memory_space<vmem>>) attributes {dimension_semantics = [#tpu.dimension_semantics<parallel>], iteration_bounds = array<i64: 1>, scalar_prefetch = 0 : i64, scratch_operands = 0 : i64, tpu.core_type = #tpu.core_type<tc>, window_params = [{transform_indices = @transform_0, window_bounds = array<i64: 8, 32>}, {pipeline_mode = #tpu.pipeline_mode<synchronous>, transform_indices = @transform_1, window_bounds = array<i64: 288, 128>}, {pipeline_mode = #tpu.pipeline_mode<synchronous>, transform_indices = @transform_2, window_bounds = array<i64: 8, 128>}, {transform_indices = @transform_3, window_bounds = array<i64: 8, 8>}]} {
    %c0 = arith.constant 0 : index
    %c0_0 = arith.constant 0 : index
    %0 = vector.load %arg1[%c0, %c0_0] : memref<8x32xf32, #tpu.memory_space<vmem>>, vector<8x32xf32>
    %1 = arith.truncf %0 : vector<8x32xf32> to vector<8x32xbf16>
    %c0_1 = arith.constant 0 : index
    %c0_2 = arith.constant 0 : index
    %2 = vector.load %arg2[%c0_1, %c0_2] : memref<288x128xbf16, #tpu.memory_space<vmem>>, vector<32x128xbf16>
    %c32 = arith.constant 32 : index
    %c0_3 = arith.constant 0 : index
    %3 = vector.load %arg2[%c32, %c0_3] : memref<288x128xbf16, #tpu.memory_space<vmem>>, vector<128x128xbf16>
    %c160 = arith.constant 160 : index
    %c0_4 = arith.constant 0 : index
    %4 = vector.load %arg2[%c160, %c0_4] : memref<288x128xbf16, #tpu.memory_space<vmem>>, vector<128x128xbf16>
    %c0_5 = arith.constant 0 : index
    %c0_6 = arith.constant 0 : index
    %5 = vector.load %arg3[%c0_5, %c0_6] : memref<8x128xf32, #tpu.memory_space<vmem>>, vector<1x128xf32>
    %cst = arith.constant dense<0.000000e+00> : vector<8x128xf32>
    %6 = tpu.matmul %1, %2, %cst {dimension_numbers = #tpu.dot_dimension_numbers<[1], [0], [0], [1], [0, 0, 1, 1], [], []>} : vector<8x32xbf16>, vector<32x128xbf16>, vector<8x128xf32> -> vector<8x128xf32>
    %7 = vector.broadcast %5 : vector<1x128xf32> to vector<8x128xf32>
    %8 = arith.addf %6, %7 : vector<8x128xf32>
    %9 = arith.truncf %8 : vector<8x128xf32> to vector<8x128xbf16>
    %cst_7 = arith.constant 0.000000e+00 : bf16
    %10 = vector.broadcast %cst_7 : bf16 to vector<8x128xbf16>
    %11 = arith.maximumf %9, %10 : vector<8x128xbf16>
    %cst_8 = arith.constant dense<0.000000e+00> : vector<8x128xf32>
    %12 = tpu.matmul %11, %3, %cst_8 {dimension_numbers = #tpu.dot_dimension_numbers<[1], [0], [0], [1], [0, 0, 1, 1], [], []>} : vector<8x128xbf16>, vector<128x128xbf16>, vector<8x128xf32> -> vector<8x128xf32>
    %13 = arith.truncf %12 : vector<8x128xf32> to vector<8x128xbf16>
    %cst_9 = arith.constant 0.000000e+00 : bf16
    %14 = vector.broadcast %cst_9 : bf16 to vector<8x128xbf16>
    %15 = arith.maximumf %13, %14 : vector<8x128xbf16>
    %cst_10 = arith.constant dense<0.000000e+00> : vector<8x128xf32>
    %16 = tpu.matmul %15, %4, %cst_10 {dimension_numbers = #tpu.dot_dimension_numbers<[1], [0], [0], [1], [0, 0, 1, 1], [], []>} : vector<8x128xbf16>, vector<128x128xbf16>, vector<8x128xf32> -> vector<8x128xf32>
    %17 = vector.extract_strided_slice %16 {offsets = [0, 0], sizes = [8, 8], strides = [1, 1]} : vector<8x128xf32> to vector<8x8xf32>
    %c0_11 = arith.constant 0 : index
    %c0_12 = arith.constant 0 : index
    %18 = vector.load %arg4[%c0_11, %c0_12] : memref<8x8xf32, #tpu.memory_space<vmem>>, vector<8x8xf32>
    tpu.vector_store %arg4[%c0_11, %c0_12], %17 {strides = array<i32>} : memref<8x8xf32, #tpu.memory_space<vmem>>, vector<8x8xf32>,
    return
  }
  func.func @transform_0(%arg0: i32) -> (i32, i32) {
    %c0_i32 = arith.constant 0 : i32
    %c0_i32_0 = arith.constant 0 : i32
    return %arg0, %c0_i32 : i32, i32
  }
  func.func @transform_1(%arg0: i32) -> (i32, i32) {
    %c0_i32 = arith.constant 0 : i32
    %c0_i32_0 = arith.constant 0 : i32
    %c0_i32_1 = arith.constant 0 : i32
    return %c0_i32, %c0_i32_0 : i32, i32
  }
  func.func @transform_2(%arg0: i32) -> (i32, i32) {
    %c0_i32 = arith.constant 0 : i32
    %c0_i32_0 = arith.constant 0 : i32
    %c0_i32_1 = arith.constant 0 : i32
    return %c0_i32, %c0_i32_0 : i32, i32
  }
  func.func @transform_3(%arg0: i32) -> (i32, i32) {
    %c0_i32 = arith.constant 0 : i32
    %c0_i32_0 = arith.constant 0 : i32
    return %arg0, %c0_i32 : i32, i32
  }
}

</mosaic_0001>

<bundles_post_ra>
// kernel: tpu_custom_call.1
= control target key start
LH: loop header
LB: loop body
LE: loop exit
PB: predicated region body
PF: predicated region fallthrough
CT: control target
= control target key end

     0   :  { %8 = vsyncpa [#allocation3], 0  ;;  %s596_s0 = inlined_call_operand.hbm [shape: f32[8,32], index: 0, kind: input, shape index: {}]   ;;  %s597_s1 = inlined_call_operand.hbm [shape: bf16[288,128], index: 1, kind: input, shape index: {}]   ;;  %s598_s2 = inlined_call_operand.hbm [shape: f32[8,128], index: 2, kind: input, shape index: {}]   ;;  %s599_s3 = inlined_call_operand.hbm [shape: f32[8,8], index: 3, kind: output, shape index: {}]  }
   0x1   :  { %9 = vsyncpa [#allocation6], 0 }
   0x2   :  { %10 = vsyncpa [#allocation4], 0  ;;  %s552_s12 = smov [#allocation5]  }
   0x3   :  { %s26_s13 = sshll.u32 %s552_s12, 4  ;;  %s27_s13 = int_to_ptr.vmem [resolvable:$true] %s26_s13 }
   0x4   :  { %s474_s14 = scalar_lea.vmem %s27_s13, 2304  ;;  %p479_p1 = scmp.lt.s32.totalorder %s27_s13, %s27_s13 }
   0x5   :  { %p475_p0 = scmp.ne.s32.totalorder %s27_s13, %s474_s14  ;;  %p480_p2 = scmp.lt.s32.totalorder %s474_s14, %s474_s14 }
   0x7   :  { %p481_p3 = por %p480_p2, %p479_p1 }
   0x9   :  { %p482_p4 = pnand %p481_p3, %p475_p0 }
   0xb   :  { %485 = shalt.err (!%p482_p4)
}
   0xc   :  { %s553_s15 = smov 64   ;;  %s554_s16 = smov 4  }
   0xd   :  { %32 = dma.hbm_to_vmem [thread:$0]  %s597_s1, 2304, %s27_s13, [#allocation6], %s553_s15, %s553_s15, %s554_s16  }
   0xe   :  { %s555_s19 = smov [#allocation2]   ;;  %s556_s21 = smov [#allocation7]  }
   0xf   :  { %s17_s20 = sshll.u32 %s555_s19, 4  ;;  %s39_s22 = sshll.u32 %s556_s21, 4  ;;  %s18_s20 = int_to_ptr.vmem [resolvable:$true] %s17_s20  ;;  %s40_s22 = int_to_ptr.vmem [resolvable:$true] %s39_s22 }
  0x10   :  { %s494_s23 = scalar_lea.vmem %s18_s20, 128  ;;  %p499_p6 = scmp.lt.s32.totalorder %s18_s20, %s18_s20 }
  0x11   :  { %p495_p5 = scmp.ne.s32.totalorder %s18_s20, %s494_s23  ;;  %p500_p7 = scmp.lt.s32.totalorder %s494_s23, %s494_s23 }
  0x13   :  { %p501_p8 = por %p500_p7, %p499_p6 }
  0x15   :  { %p502_p9 = pnand %p501_p8, %p495_p5 }
  0x17   :  { %505 = shalt.err (!%p502_p9)
}
  0x18   :  { %20 = dma.hbm_to_vmem [thread:$0]  %s596_s0, 128, %s18_s20, [#allocation3]  }
  0x19   :  { %s514_s26 = scalar_lea.vmem %s40_s22, 128  ;;  %p519_p11 = scmp.lt.s32.totalorder %s40_s22, %s40_s22 }
  0x1a   :  { %p515_p10 = scmp.ne.s32.totalorder %s40_s22, %s514_s26  ;;  %p520_p12 = scmp.lt.s32.totalorder %s514_s26, %s514_s26 }
  0x1c   :  { %p521_p13 = por %p520_p12, %p519_p11 }
  0x1e   :  { %p522_p0 = pnand %p521_p13, %p515_p10 }
  0x20   :  { %525 = shalt.err (!%p522_p0)
}
  0x21   :  { %42 = dma.hbm_to_vmem [thread:$0]  %s598_s2, 128, %s40_s22, [#allocation6]  }
  0x22   :  { %546 = dma.done.wait [#allocation3], 128  }
  0x23   :  { %547 = vsyncadd [#allocation3], 4294967168 }
  0x24   :  { %548 = dma.done.wait [#allocation6], 2432  }
  0x25   :  { %549 = vsyncadd [#allocation6], 4294964864  ;;  %v557_v0 = vmov 0.0   ;;  %vm558_vm0 = vmmov 0   ;;  %v448_v1 = vld [vmem:[#allocation5 + $0x8] sm:$0xff]   ;;  %v449_v2 = vld [vmem:[#allocation5] sm:$0xff]  }
  0x26   :  { %391 = vmatprep.subr.bf16.mxu0 %v557_v0  ;;  %395 = vmatprep.mubr.msk.bf16.mxu0 %vm558_vm0, %v557_v0  ;;  %v53_v3 = vld [vmem:[#allocation2] sm:$0xff]  ;;  %v450_v4 = vld [vmem:[#allocation5 + $0x48] sm:$0xff]   ;;  %v451_v6 = vld [vmem:[#allocation5 + $0x40] sm:$0xff]   ;;  %vm108_vm1 = vcmask 261120   ;;  %v559_v26 = vmov 0   ;;  %s560_s0 = smov [#allocation8]  }
  0x27   :  { %399 = vmatprep.subr.bf16.mxu1 %v557_v0  ;;  %415 = vmatprep.mubr.msk.bf16.mxu1 %vm558_vm0, %v557_v0  ;;  %v54_v5 = vpack.c.bf16 %v53_v3, %v53_v3  ;;  %v452_v7 = vld [vmem:[#allocation5 + $0x38] sm:$0xff]   ;;  %v453_v8 = vld [vmem:[#allocation5 + $0x30] sm:$0xff]   ;;  %v454_v9 = vld [vmem:[#allocation5 + $0x28] sm:$0xff]   ;;  %s340_s2 = sshll.u32 %s560_s0, 4  ;;  %vm332_vm2 = vcmask 64512   ;;  %s341_s2 = int_to_ptr.vmem [resolvable:$true] %s340_s2 }
  0x28   :  { %392 = vmatpush3.bf16.msra.mxu0 %v448_v1  ;;  %400 = vmatpush3.bf16.msra.mxu1 %v450_v4  ;;  %v455_v10 = vld [vmem:[#allocation5 + $0x20] sm:$0xff]   ;;  %v456_v11 = vld [vmem:[#allocation5 + $0x18] sm:$0xff]   ;;  %v457_v12 = vld [vmem:[#allocation5 + $0x10] sm:$0xff]   ;;  %s526_s28 = scalar_lea.vmem %s341_s2, 128  ;;  %p531_p2 = scmp.lt.s32.totalorder %s341_s2, %s341_s2 }
  0x29   :  { %393 = vmatprep.subr.bf16.mxu0 %v557_v0  ;;  %401 = vmatprep.subr.bf16.mxu1 %v557_v0  ;;  %v458_v13 = vld [vmem:[#allocation5 + $0x88] sm:$0xff]   ;;  %v459_v14 = vld [vmem:[#allocation5 + $0x80] sm:$0xff]   ;;  %v460_v15 = vld [vmem:[#allocation5 + $0x78] sm:$0xff]   ;;  %p527_p1 = scmp.ne.s32.totalorder %s341_s2, %s526_s28  ;;  %p532_p3 = scmp.lt.s32.totalorder %s526_s28, %s526_s28 }
  0x2a   :  { %v461_v16 = vld [vmem:[#allocation5 + $0x70] sm:$0xff]   ;;  %v462_v17 = vld [vmem:[#allocation5 + $0x68] sm:$0xff]   ;;  %v463_v18 = vld [vmem:[#allocation5 + $0x60] sm:$0xff]  }
  0x2b   :  { %v464_v19 = vld [vmem:[#allocation5 + $0x58] sm:$0xff]   ;;  %v350_v20 = vld [vmem:[#allocation7] ss:$0 sm:$0xff]  ;;  %p533_p4 = por %p532_p3, %p531_p2 }
  0x2c   :  { %394 = vmatpush3.bf16.msra.mxu0 %v449_v2  ;;  %402 = vmatpush3.bf16.msra.mxu1 %v451_v6  ;;  %v465_v29 = vld [vmem:[#allocation5 + $0x50] sm:$0xff]  }
  0x2d   :  { %419 = vmatprep.subr.bf16.mxu0 %v557_v0  ;;  %403 = vmatprep.subr.bf16.mxu1 %v557_v0  ;;  %p534_p5 = pnand %p533_p4, %p527_p1 }
  0x2f   :  { %396 = vmatmul.mubr.msk.bf16.vlgmr.msra.gmra.mxu0 %vm108_vm1, %v54_v5 }
  0x30   :  { %435 = vmatprep.mubr.msk.bf16.mxu0 %vm558_vm0, %v557_v0  ;;  %404 = vmatpush3.bf16.msra.mxu1 %v452_v7 }
  0x31   :  { %405 = vmatprep.subr.bf16.mxu1 %v557_v0  ;;  %420 = vmatpush3.bf16.msra.mxu0 %v458_v13 }
  0x32   :  { %421 = vmatprep.subr.bf16.mxu0 %v557_v0 }
  0x34   :  { %406 = vmatpush3.bf16.msra.mxu1 %v453_v8 }
  0x35   :  { %407 = vmatprep.subr.bf16.mxu1 %v557_v0  ;;  %422 = vmatpush3.bf16.msra.mxu0 %v459_v14 }
  0x36   :  { %423 = vmatprep.subr.bf16.mxu0 %v557_v0 }
  0x38   :  { %408 = vmatpush3.bf16.msra.mxu1 %v454_v9 }
  0x39   :  { %409 = vmatprep.subr.bf16.mxu1 %v557_v0  ;;  %424 = vmatpush3.bf16.msra.mxu0 %v460_v15 }
  0x3a   :  { %425 = vmatprep.subr.bf16.mxu0 %v557_v0 }
  0x3c   :  { %410 = vmatpush3.bf16.msra.mxu1 %v455_v10 }
  0x3d   :  { %411 = vmatprep.subr.bf16.mxu1 %v557_v0  ;;  %426 = vmatpush3.bf16.msra.mxu0 %v461_v16 }
  0x3e   :  { %427 = vmatprep.subr.bf16.mxu0 %v557_v0 }
  0x40   :  { %412 = vmatpush3.bf16.msra.mxu1 %v456_v11 }
  0x41   :  { %413 = vmatprep.subr.bf16.mxu1 %v557_v0  ;;  %428 = vmatpush3.bf16.msra.mxu0 %v462_v17 }
  0x42   :  { %429 = vmatprep.subr.bf16.mxu0 %v557_v0 }
  0x44   :  { %414 = vmatpush3.bf16.msra.mxu1 %v457_v12 }
  0x45   :  { %430 = vmatpush3.bf16.msra.mxu0 %v463_v18 }
  0x46   :  { %431 = vmatprep.subr.bf16.mxu0 %v557_v0 }
  0x49   :  { %432 = vmatpush3.bf16.msra.mxu0 %v464_v19 }
  0x4a   :  { %433 = vmatprep.subr.bf16.mxu0 %v557_v0 }
  0x4d   :  { %434 = vmatpush3.bf16.msra.mxu0 %v465_v29 }
  0xef   :  { %v146_v21 = vpop.f32.mrf.mxu0 }
  0xf0   :  { %v147_v22 = vadd.f32 %v350_v20, %v146_v21 }
  0xf1   :  { %v397_v23 = vpop.f32.mrf.mxu0 }
  0xf2   :  { %v152_v24 = vpack.c.bf16 %v147_v22, %v147_v22 }
  0xf3   :  { %v149_v25 = vpop.f32.mrf.mxu0 }
  0xf4   :  { %v153_v27 = vmax.bf16 %v559_v26, %v152_v24 }
  0xf5   :  { %v398_v28 = vpop.f32.mrf.mxu0 }
  0xf6   :  { %416 = vmatmul.mubr.bf16.vlgmr.msra.gmra.mxu1 %v153_v27 }
 0x1b6   :  { %v236_v30 = vpop.f32.mrf.mxu1 }
 0x1b7   :  { %v242_v31 = vpack.c.bf16 %v236_v30, %v236_v30 }
 0x1b8   :  { %v417_v32 = vpop.f32.mrf.mxu1 }
 0x1b9   :  { %v243_v33 = vmax.bf16 %v559_v26, %v242_v31 }
 0x1ba   :  { %v239_v34 = vpop.f32.mrf.mxu1 }
 0x1bb   :  { %436 = vmatmul.mubr.bf16.vlgmr.msra.gmra.mxu0 %v243_v33 }
 0x1bc   :  { %v418_v35 = vpop.f32.mrf.mxu1 }
 0x27b   :  { %v326_v36 = vpop.f32.mrf.mxu0 }
 0x27c   :  { %333 = vst.msk [vmem:[#allocation8] sm:$0xff] %vm332_vm2, %v326_v36 }
 0x27d   :  { %v437_v37 = vpop.f32.mrf.mxu0 }
 0x27e   :  { %537 = shalt.err (!%p534_p5)
}
 0x27f   :  { %343 = dma.vmem_to_hbm [thread:$0]  %s341_s2, 128, %s599_s3, [#allocation4]   ;;  %v329_v38 = vpop.f32.mrf.mxu0 }
 0x281   :  { %v438_v39 = vpop.f32.mrf.mxu0 }
 0x282   :  { %550 = dma.done.wait [#allocation4], 128  }
 0x283   :  { %551 = vsyncadd [#allocation4], 4294967168 }
 0x284   :  { %347 = vsyncpa [#allocation3], 1 }
 0x285   :  { %348 = vsyncpa [#allocation6], 1 }
 0x286   :  { %349 = vsyncpa [#allocation4], 1 }

</bundles_post_ra>
